<compile_context>
chip_gen: v7x
topology: tpu7x:2x2x1
jax: 0.10.0
libtpu: 0.0.40
codegen_flags: <defaults>
</compile_context>

<pallas_src>
import functools

import jax
import jax.numpy as jnp
from jax.experimental import pallas as pl
from jax.experimental.pallas import tpu as pltpu


_PADV = -1e30                            # finite "-inf": exp underflows to 0, sums stay finite
_LOGITS_VMEM_BUDGET = 24 * 1024 * 1024   # cap on the double-buffered logits tile (v7x-safe)


def _round_up(x, m):
    return ((x + m - 1) // m) * m


def _cdiv(a, b):
    return -(-a // b)


def _label_smooth_ce_kernel(x_ref, t_ref, nll_ref, smooth_ref,
                            m_acc, d_acc, sx_acc, tx_acc,
                            *, num_classes, c_tiles, last_tile_valid):
    j = pl.program_id(1)                 # class-tile index (innermost reduction axis)

    # ---- per-batch-tile accumulator init
    @pl.when(j == 0)
    def _():
        m_acc[...] = jnp.full_like(m_acc, -jnp.inf)
        d_acc[...] = jnp.zeros_like(d_acc)
        sx_acc[...] = jnp.zeros_like(sx_acc)
        tx_acc[...] = jnp.zeros_like(tx_acc)

    x = x_ref[...].astype(jnp.float32)   # (tb, tc), f32 compute even for bf16 ingest
    tb, tc = x.shape

    # ---- online log-sum-exp (padded lanes hold _PADV: max unaffected, exp -> 0 exactly)
    m_old = m_acc[...]
    m_new = jnp.maximum(m_old, jnp.max(x, axis=-1, keepdims=True))
    alpha = jnp.exp(m_old - m_new)       # 0 on first tile (m_old = -inf)
    p = jnp.exp(x - m_new)
    d_acc[...] = alpha * d_acc[...] + jnp.sum(p, axis=-1, keepdims=True)
    m_acc[...] = m_new

    # ---- x[row, target] gather via local lane iota vs per-row local target.
    # Padded lanes never match because valid targets are < num_classes.
    lane = jax.lax.broadcasted_iota(jnp.int32, (tb, tc), 1)
    t_local = t_ref[...] - j * tc        # (tb, 1) int32
    tx_acc[...] = tx_acc[...] + jnp.sum(
        jnp.where(lane == t_local, x, 0.0), axis=-1, keepdims=True)

    # ---- running sum of logits; mask only on the (single) padded class tile
    def _sx(mask_pad):
        xs = jnp.where(lane < last_tile_valid, x, 0.0) if mask_pad else x
        sx_acc[...] = sx_acc[...] + jnp.sum(xs, axis=-1, keepdims=True)

    if last_tile_valid < tc:             # static: class padding exists
        if c_tiles > 1:
            @pl.when(j < c_tiles - 1)
            def _():
                _sx(False)               # interior tiles: mask-free fast path

            @pl.when(j == c_tiles - 1)
            def _():
                _sx(True)                # only the last tile masks its padded lanes
        else:
            _sx(True)
    else:
        _sx(False)

    # ---- end of class sweep: emit per-row partials (final reduce/scale in wrapper)
    @pl.when(j == c_tiles - 1)
    def _():
        logz = m_acc[...] + jnp.log(d_acc[...])               # (tb, 1)
        nll_ref[...] = logz - tx_acc[...]                     # -log_softmax(x)[target]
        smooth_ref[...] = num_classes * logz - sx_acc[...]    # -sum_c log_softmax(x)


def label_smoothing_cross_entropy(logits, target, eps=0.1, reduction='mean',
                                  tb=None, tc=None):
    """logits: [B, C] float32 or bfloat16, target: [B] integer class indices.

    Returns a scalar float32 loss matching LabelSmoothingCrossEntropy.forward.
    """
    assert reduction in ('mean', 'sum'), "only 'mean'/'sum' reductions supported"
    B, C = logits.shape
    itemsize = jnp.dtype(logits.dtype).itemsize

    # ---- tile selection: few, large, balanced tiles (each grid step costs ~0.35us),
    #      capped so the double-buffered logits block stays within the VMEM budget.
    if tb is None:
        n_b = _cdiv(_round_up(B, 8), 256)
        tb = _round_up(_cdiv(B, n_b), 8)
    else:
        tb = _round_up(tb, 8)
    c128 = _round_up(C, 128)
    if tc is None:
        tc_cap = max(128, (_LOGITS_VMEM_BUDGET // (2 * tb * itemsize)) // 128 * 128)
        tc_target = min(8192, c128, tc_cap)
        n_c = _cdiv(c128, tc_target)
        tc = _round_up(_cdiv(c128, n_c), 128)   # balanced tiles -> minimal class padding
    else:
        tc = _round_up(tc, 128)

    b_pad = _round_up(B, tb)
    c_pad = _round_up(C, tc)
    b_tiles = b_pad // tb
    c_tiles = c_pad // tc
    last_tile_valid = C - (c_tiles - 1) * tc    # valid lanes in the last class tile

    x = logits
    if c_pad != C:
        # finite "-inf" padding: no per-element masking needed for max / exp anywhere.
        x = jnp.pad(x, ((0, 0), (0, c_pad - C)), constant_values=_PADV)
    if b_pad != B:
        x = jnp.pad(x, ((0, b_pad - B), (0, 0)))        # padded rows sliced off below
    t = target.astype(jnp.int32)
    if b_pad != B:
        t = jnp.pad(t, (0, b_pad - B))
    t2d = t.reshape(b_pad, 1)

    kernel = functools.partial(
        _label_smooth_ce_kernel, num_classes=C, c_tiles=c_tiles,
        last_tile_valid=last_tile_valid)

    nll_rows, smooth_rows = pl.pallas_call(
        kernel,
        out_shape=(jax.ShapeDtypeStruct((b_pad, 1), jnp.float32),
                   jax.ShapeDtypeStruct((b_pad, 1), jnp.float32)),
        grid_spec=pltpu.PrefetchScalarGridSpec(
            num_scalar_prefetch=0,
            grid=(b_tiles, c_tiles),
            in_specs=[
                pl.BlockSpec((tb, tc), lambda i, j: (i, j)),   # logits tile
                pl.BlockSpec((tb, 1), lambda i, j: (i, 0)),    # targets (resident per i)
            ],
            out_specs=(
                pl.BlockSpec((tb, 1), lambda i, j: (i, 0)),    # per-row nll partials
                pl.BlockSpec((tb, 1), lambda i, j: (i, 0)),    # per-row smooth partials
            ),
            scratch_shapes=[
                pltpu.VMEM((tb, 1), jnp.float32),   # running max
                pltpu.VMEM((tb, 1), jnp.float32),   # running sum exp
                pltpu.VMEM((tb, 1), jnp.float32),   # running sum x
                pltpu.VMEM((tb, 1), jnp.float32),   # running x[target]
            ],
        ),
        compiler_params=pltpu.CompilerParams(
            # batch axis parallel -> megacore-split on v7x; class axis is the reduction.
            dimension_semantics=("parallel", "arbitrary"),
            vmem_limit_bytes=32 * 1024 * 1024,
        ),
    )(x, t2d)

    # ---- trivial XLA-side finalize: slice off padded rows, reduce, apply smoothing.
    nll = nll_rows[:B, 0]
    smooth = smooth_rows[:B, 0]
    if reduction == 'mean':
        nll_r = jnp.mean(nll)
        smooth_r = jnp.mean(smooth)
    else:
        nll_r = jnp.sum(nll)
        smooth_r = jnp.sum(smooth)
    return (1.0 - eps) * nll_r + smooth_r * (eps / C)


def _reference(logits, target, eps=0.1, reduction='mean'):
    x = logits.astype(jnp.float32)
    logp = jax.nn.log_softmax(x, axis=-1)
    nll = -logp[jnp.arange(x.shape[0]), target]
    smooth = -jnp.sum(logp, axis=-1)
    if reduction == 'sum':
        nll_r, smooth_r = jnp.sum(nll), jnp.sum(smooth)
    else:
        nll_r, smooth_r = jnp.mean(nll), jnp.mean(smooth)
    return (1.0 - eps) * nll_r + smooth_r * eps / x.shape[-1]


if __name__ == "__main__":
    key = jax.random.PRNGKey(0)

    # 1) small shape from the module spec: [batch_size, num_classes] = [8, 32]
    #    (single padded class tile -> masked-only sx branch)
    kx, kt, key = jax.random.split(key, 3)
    B, C = 8, 32
    logits = jax.random.normal(kx, (B, C), dtype=jnp.float32)
    target = jax.random.randint(kt, (B,), 0, C, dtype=jnp.int32)
    loss = jax.block_until_ready(label_smoothing_cross_entropy(logits, target))
    ref = _reference(logits, target)
    assert jnp.allclose(loss, ref, atol=1e-5, rtol=1e-5), (loss, ref)

    # 2) non-aligned shape with a multi-tile grid (padding, pl.when fast/masked sx paths,
    #    online logsumexp accumulation): B=37, C=300, tiles (16, 128) -> grid (3, 3)
    kx, kt, key = jax.random.split(key, 3)
    B, C = 37, 300
    logits = 3.0 * jax.random.normal(kx, (B, C), dtype=jnp.float32)
    target = jax.random.randint(kt, (B,), 0, C, dtype=jnp.int32)
    loss = jax.block_until_ready(
        label_smoothing_cross_entropy(logits, target, reduction='mean', tb=16, tc=128))
    ref = _reference(logits, target, reduction='mean')
    assert jnp.allclose(loss, ref, atol=1e-4, rtol=1e-4), (loss, ref)

    loss_s = jax.block_until_ready(
        label_smoothing_cross_entropy(logits, target, reduction='sum', tb=16, tc=128))
    ref_s = _reference(logits, target, reduction='sum')
    assert jnp.allclose(loss_s, ref_s, atol=1e-3, rtol=1e-4), (loss_s, ref_s)

    # 3) default (auto) tiling with class padding and c_tiles == 1
    kx, kt, key = jax.random.split(key, 3)
    B, C = 24, 200
    logits = jax.random.normal(kx, (B, C), dtype=jnp.float32)
    target = jax.random.randint(kt, (B,), 0, C, dtype=jnp.int32)
    loss = jax.block_until_ready(label_smoothing_cross_entropy(logits, target))
    ref = _reference(logits, target)
    assert jnp.allclose(loss, ref, atol=1e-4, rtol=1e-4), (loss, ref)

    # 4) bf16 ingest (upcast to f32 happens inside the kernel), exact class alignment
    kx, kt, key = jax.random.split(key, 3)
    B, C = 16, 256
    logits_bf16 = jax.random.normal(kx, (B, C), dtype=jnp.float32).astype(jnp.bfloat16)
    target = jax.random.randint(kt, (B,), 0, C, dtype=jnp.int32)
    loss_b = jax.block_until_ready(label_smoothing_cross_entropy(logits_bf16, target))
    ref_b = _reference(logits_bf16, target)
    assert jnp.allclose(loss_b, ref_b, atol=1e-4, rtol=1e-4), (loss_b, ref_b)

    print("KERNEL_OK")
</pallas_src>

<mosaic_0001>
module attributes {stable_mosaic.version = 11 : i64} {
  func.func @_label_smooth_ce_kernel(%arg0: i32, %arg1: i32, %arg2: memref<8x128xf32, #tpu.memory_space<vmem>>, %arg3: memref<8x1xi32, #tpu.memory_space<vmem>>, %arg4: memref<8x1xf32, #tpu.memory_space<vmem>>, %arg5: memref<8x1xf32, #tpu.memory_space<vmem>>, %arg6: memref<8x1xf32, #tpu.memory_space<vmem>>, %arg7: memref<8x1xf32, #tpu.memory_space<vmem>>, %arg8: memref<8x1xf32, #tpu.memory_space<vmem>>, %arg9: memref<8x1xf32, #tpu.memory_space<vmem>>) attributes {dimension_semantics = [#tpu.dimension_semantics<parallel>, #tpu.dimension_semantics<arbitrary>], iteration_bounds = array<i64: 1, 1>, scalar_prefetch = 0 : i64, scratch_operands = 4 : i64, tpu.core_type = #tpu.core_type<tc>, window_params = [{transform_indices = @transform_0, window_bounds = array<i64: 8, 128>}, {transform_indices = @transform_1, window_bounds = array<i64: 8, 1>}, {transform_indices = @transform_2, window_bounds = array<i64: 8, 1>}, {transform_indices = @transform_3, window_bounds = array<i64: 8, 1>}]} {
    %c0_i32 = arith.constant 0 : i32
    %0 = arith.cmpi eq, %arg1, %c0_i32 : i32
    %1 = arith.extui %0 : i1 to i32
    %c0_i32_0 = arith.constant 0 : i32
    %2 = arith.cmpi ne, %1, %c0_i32_0 : i32
    scf.if %2 {
      %cst_27 = arith.constant 0xFF800000 : f32
      %46 = vector.broadcast %cst_27 : f32 to vector<8x1xf32>
      %c0_28 = arith.constant 0 : index
      %c0_29 = arith.constant 0 : index
      %47 = vector.load %arg6[%c0_28, %c0_29] : memref<8x1xf32, #tpu.memory_space<vmem>>, vector<8x1xf32>
      tpu.vector_store %arg6[%c0_28, %c0_29], %46 {strides = array<i32>} : memref<8x1xf32, #tpu.memory_space<vmem>>, vector<8x1xf32>,
      %cst_30 = arith.constant 0.000000e+00 : f32
      %48 = vector.broadcast %cst_30 : f32 to vector<8x1xf32>
      %c0_31 = arith.constant 0 : index
      %c0_32 = arith.constant 0 : index
      %49 = vector.load %arg7[%c0_31, %c0_32] : memref<8x1xf32, #tpu.memory_space<vmem>>, vector<8x1xf32>
      tpu.vector_store %arg7[%c0_31, %c0_32], %48 {strides = array<i32>} : memref<8x1xf32, #tpu.memory_space<vmem>>, vector<8x1xf32>,
      %cst_33 = arith.constant 0.000000e+00 : f32
      %50 = vector.broadcast %cst_33 : f32 to vector<8x1xf32>
      %c0_34 = arith.constant 0 : index
      %c0_35 = arith.constant 0 : index
      %51 = vector.load %arg8[%c0_34, %c0_35] : memref<8x1xf32, #tpu.memory_space<vmem>>, vector<8x1xf32>
      tpu.vector_store %arg8[%c0_34, %c0_35], %50 {strides = array<i32>} : memref<8x1xf32, #tpu.memory_space<vmem>>, vector<8x1xf32>,
      %cst_36 = arith.constant 0.000000e+00 : f32
      %52 = vector.broadcast %cst_36 : f32 to vector<8x1xf32>
      %c0_37 = arith.constant 0 : index
      %c0_38 = arith.constant 0 : index
      %53 = vector.load %arg9[%c0_37, %c0_38] : memref<8x1xf32, #tpu.memory_space<vmem>>, vector<8x1xf32>
      tpu.vector_store %arg9[%c0_37, %c0_38], %52 {strides = array<i32>} : memref<8x1xf32, #tpu.memory_space<vmem>>, vector<8x1xf32>,
    } else {
    }
    %c0 = arith.constant 0 : index
    %c0_1 = arith.constant 0 : index
    %3 = vector.load %arg2[%c0, %c0_1] : memref<8x128xf32, #tpu.memory_space<vmem>>, vector<8x128xf32>
    %c0_2 = arith.constant 0 : index
    %c0_3 = arith.constant 0 : index
    %4 = vector.load %arg6[%c0_2, %c0_3] : memref<8x1xf32, #tpu.memory_space<vmem>>, vector<8x1xf32>
    %cst = arith.constant dense<0xFF800000> : vector<8xf32>
    %5 = vector.multi_reduction <maximumf>, %3, %cst [1] : vector<8x128xf32> to vector<8xf32>
    %6 = vector.shape_cast %5 : vector<8xf32> to vector<8x1xf32>
    %7 = arith.maximumf %4, %6 : vector<8x1xf32>
    %8 = arith.subf %4, %7 : vector<8x1xf32>
    %9 = math.exp %8 : vector<8x1xf32>
    %10 = vector.broadcast %7 : vector<8x1xf32> to vector<8x128xf32>
    %11 = arith.subf %3, %10 : vector<8x128xf32>
    %12 = math.exp %11 : vector<8x128xf32>
    %c0_4 = arith.constant 0 : index
    %c0_5 = arith.constant 0 : index
    %13 = vector.load %arg7[%c0_4, %c0_5] : memref<8x1xf32, #tpu.memory_space<vmem>>, vector<8x1xf32>
    %14 = arith.mulf %9, %13 : vector<8x1xf32>
    %cst_6 = arith.constant dense<0.000000e+00> : vector<8xf32>
    %15 = vector.multi_reduction <add>, %12, %cst_6 [1] : vector<8x128xf32> to vector<8xf32>
    %16 = vector.shape_cast %15 : vector<8xf32> to vector<8x1xf32>
    %17 = arith.addf %14, %16 : vector<8x1xf32>
    %c0_7 = arith.constant 0 : index
    %c0_8 = arith.constant 0 : index
    %18 = vector.load %arg7[%c0_7, %c0_8] : memref<8x1xf32, #tpu.memory_space<vmem>>, vector<8x1xf32>
    tpu.vector_store %arg7[%c0_7, %c0_8], %17 {strides = array<i32>} : memref<8x1xf32, #tpu.memory_space<vmem>>, vector<8x1xf32>,
    %c0_9 = arith.constant 0 : index
    %c0_10 = arith.constant 0 : index
    %19 = vector.load %arg6[%c0_9, %c0_10] : memref<8x1xf32, #tpu.memory_space<vmem>>, vector<8x1xf32>
    tpu.vector_store %arg6[%c0_9, %c0_10], %7 {strides = array<i32>} : memref<8x1xf32, #tpu.memory_space<vmem>>, vector<8x1xf32>,
    %20 = tpu.iota {dimensions = array<i32: 1>} : vector<8x128xi32>
    %c0_11 = arith.constant 0 : index
    %c0_12 = arith.constant 0 : index
    %21 = vector.load %arg3[%c0_11, %c0_12] : memref<8x1xi32, #tpu.memory_space<vmem>>, vector<8x1xi32>
    %c128_i32 = arith.constant 128 : i32
    %22 = arith.muli %arg1, %c128_i32 : i32
    %23 = vector.broadcast %22 : i32 to vector<8x1xi32>
    %24 = arith.subi %21, %23 : vector<8x1xi32>
    %c0_13 = arith.constant 0 : index
    %c0_14 = arith.constant 0 : index
    %25 = vector.load %arg9[%c0_13, %c0_14] : memref<8x1xf32, #tpu.memory_space<vmem>>, vector<8x1xf32>
    %26 = vector.broadcast %24 : vector<8x1xi32> to vector<8x128xi32>
    %27 = arith.cmpi eq, %20, %26 : vector<8x128xi32>
    %cst_15 = arith.constant 0.000000e+00 : f32
    %28 = vector.broadcast %cst_15 : f32 to vector<8x128xf32>
    %29 = arith.select %27, %3, %28 : vector<8x128xi1>, vector<8x128xf32>
    %cst_16 = arith.constant dense<0.000000e+00> : vector<8xf32>
    %30 = vector.multi_reduction <add>, %29, %cst_16 [1] : vector<8x128xf32> to vector<8xf32>
    %31 = vector.shape_cast %30 : vector<8xf32> to vector<8x1xf32>
    %32 = arith.addf %25, %31 : vector<8x1xf32>
    %c0_17 = arith.constant 0 : index
    %c0_18 = arith.constant 0 : index
    %33 = vector.load %arg9[%c0_17, %c0_18] : memref<8x1xf32, #tpu.memory_space<vmem>>, vector<8x1xf32>
    tpu.vector_store %arg9[%c0_17, %c0_18], %32 {strides = array<i32>} : memref<8x1xf32, #tpu.memory_space<vmem>>, vector<8x1xf32>,
    %c32_i32 = arith.constant 32 : i32
    %34 = vector.broadcast %c32_i32 : i32 to vector<8x128xi32>
    %35 = arith.cmpi slt, %20, %34 : vector<8x128xi32>
    %cst_19 = arith.constant 0.000000e+00 : f32
    %36 = vector.broadcast %cst_19 : f32 to vector<8x128xf32>
    %37 = arith.select %35, %3, %36 : vector<8x128xi1>, vector<8x128xf32>
    %c0_20 = arith.constant 0 : index
    %c0_21 = arith.constant 0 : index
    %38 = vector.load %arg8[%c0_20, %c0_21] : memref<8x1xf32, #tpu.memory_space<vmem>>, vector<8x1xf32>
    %cst_22 = arith.constant dense<0.000000e+00> : vector<8xf32>
    %39 = vector.multi_reduction <add>, %37, %cst_22 [1] : vector<8x128xf32> to vector<8xf32>
    %40 = vector.shape_cast %39 : vector<8xf32> to vector<8x1xf32>
    %41 = arith.addf %38, %40 : vector<8x1xf32>
    %c0_23 = arith.constant 0 : index
    %c0_24 = arith.constant 0 : index
    %42 = vector.load %arg8[%c0_23, %c0_24] : memref<8x1xf32, #tpu.memory_space<vmem>>, vector<8x1xf32>
    tpu.vector_store %arg8[%c0_23, %c0_24], %41 {strides = array<i32>} : memref<8x1xf32, #tpu.memory_space<vmem>>, vector<8x1xf32>,
    %c0_i32_25 = arith.constant 0 : i32
    %43 = arith.cmpi eq, %arg1, %c0_i32_25 : i32
    %44 = arith.extui %43 : i1 to i32
    %c0_i32_26 = arith.constant 0 : i32
    %45 = arith.cmpi ne, %44, %c0_i32_26 : i32
    scf.if %45 {
      %c0_27 = arith.constant 0 : index
      %c0_28 = arith.constant 0 : index
      %46 = vector.load %arg6[%c0_27, %c0_28] : memref<8x1xf32, #tpu.memory_space<vmem>>, vector<8x1xf32>
      %c0_29 = arith.constant 0 : index
      %c0_30 = arith.constant 0 : index
      %47 = vector.load %arg7[%c0_29, %c0_30] : memref<8x1xf32, #tpu.memory_space<vmem>>, vector<8x1xf32>
      %48 = math.log %47 : vector<8x1xf32>
      %49 = arith.addf %46, %48 : vector<8x1xf32>
      %c0_31 = arith.constant 0 : index
      %c0_32 = arith.constant 0 : index
      %50 = vector.load %arg9[%c0_31, %c0_32] : memref<8x1xf32, #tpu.memory_space<vmem>>, vector<8x1xf32>
      %51 = arith.subf %49, %50 : vector<8x1xf32>
      %c0_33 = arith.constant 0 : index
      %c0_34 = arith.constant 0 : index
      %52 = vector.load %arg4[%c0_33, %c0_34] : memref<8x1xf32, #tpu.memory_space<vmem>>, vector<8x1xf32>
      tpu.vector_store %arg4[%c0_33, %c0_34], %51 {strides = array<i32>} : memref<8x1xf32, #tpu.memory_space<vmem>>, vector<8x1xf32>,
      %cst_35 = arith.constant 3.200000e+01 : f32
      %53 = vector.broadcast %cst_35 : f32 to vector<8x1xf32>
      %54 = arith.mulf %53, %49 : vector<8x1xf32>
      %c0_36 = arith.constant 0 : index
      %c0_37 = arith.constant 0 : index
      %55 = vector.load %arg8[%c0_36, %c0_37] : memref<8x1xf32, #tpu.memory_space<vmem>>, vector<8x1xf32>
      %56 = arith.subf %54, %55 : vector<8x1xf32>
      %c0_38 = arith.constant 0 : index
      %c0_39 = arith.constant 0 : index
      %57 = vector.load %arg5[%c0_38, %c0_39] : memref<8x1xf32, #tpu.memory_space<vmem>>, vector<8x1xf32>
      tpu.vector_store %arg5[%c0_38, %c0_39], %56 {strides = array<i32>} : memref<8x1xf32, #tpu.memory_space<vmem>>, vector<8x1xf32>,
    } else {
    }
    return
  }
  func.func @transform_0(%arg0: i32, %arg1: i32) -> (i32, i32) {
    %c0_i32 = arith.constant 0 : i32
    return %arg0, %arg1 : i32, i32
  }
  func.func @transform_1(%arg0: i32, %arg1: i32) -> (i32, i32) {
    %c0_i32 = arith.constant 0 : i32
    %c0_i32_0 = arith.constant 0 : i32
    return %arg0, %c0_i32 : i32, i32
  }
  func.func @transform_2(%arg0: i32, %arg1: i32) -> (i32, i32) {
    %c0_i32 = arith.constant 0 : i32
    %c0_i32_0 = arith.constant 0 : i32
    return %arg0, %c0_i32 : i32, i32
  }
  func.func @transform_3(%arg0: i32, %arg1: i32) -> (i32, i32) {
    %c0_i32 = arith.constant 0 : i32
    %c0_i32_0 = arith.constant 0 : i32
    return %arg0, %c0_i32 : i32, i32
  }
}

</mosaic_0001>

<bundles_post_ra>
// kernel: tpu_custom_call.1
= control target key start
LH: loop header
LB: loop body
LE: loop exit
PB: predicated region body
PF: predicated region fallthrough
CT: control target
= control target key end

     0   :  { %vm17_vm0 = vcmask 7168   ;;  %v103_v1 = vmov -inf   ;;  %v104_v2 = vmov 0   ;;  %v105_v3 = vmov 0.0   ;;  %s148_s0 = inlined_call_operand.vmem [shape: f32[8,128], index: 0, kind: input, shape index: {}]   ;;  %s149_s1 = inlined_call_operand.vmem [shape: s32[8,1], index: 1, kind: input, shape index: {}]   ;;  %s150_s2 = inlined_call_operand.vmem [shape: f32[8,1], index: 2, kind: output, shape index: {0}]   ;;  %s151_s3 = inlined_call_operand.vmem [shape: f32[8,1], index: 3, kind: output, shape index: {1}]  }
   0x1   :  { %v22_v0 = vld [vmem:[%s148_s0] sm:$0xff]  ;;  %18 = vst.msk [vmem:[#allocation2] sm:$0xff] %vm17_vm0, %v103_v1  ;;  %95 = vset.pattern.permute.xlu0 %v104_v2  ;;  %96 = vset.pattern.permute.xlu1 %v104_v2  ;;  %19 = vst.msk [vmem:[#allocation3] sm:$0xff] %vm17_vm0, %v105_v3  ;;  %v46_v12 = vlaneseq }
   0x2   :  { %24 = vmax.xlane.f32.xlu0 %v22_v0  ;;  %20 = vst.msk [vmem:[#allocation4] sm:$0xff] %vm17_vm0, %v105_v3  ;;  %21 = vst.msk [vmem:[#allocation5] sm:$0xff] %vm17_vm0, %v105_v3  ;;  %v48_v4 = vld [vmem:[%s149_s1] sm:$0xff] }
   0x3   :  { %54 = vperm.xlu1 %96, %v48_v4   ;;  %v47_v13 = vand.u32 127, %v46_v12 }
   0x5   :  { %vm62_vm2 = vcmp.lt.s32.totalorder %v47_v13, 32 }
   0x6   :  { %v63_v17 = vsel %vm62_vm2, %v22_v0, 0.0 }
   0x8   :  { %v23_v5 = vld [vmem:[#allocation2] sm:$0xff]  ;;  %v38_v20 = vld [vmem:[#allocation3] sm:$0xff] }
   0x9   :  { %v52_v24 = vld [vmem:[#allocation5] sm:$0xff]  ;;  %v64_v27 = vld [vmem:[#allocation4] sm:$0xff] }
  0x82   :  { %v55_v14 = vpop.permute.xlu1 %54 }
  0x83   :  { %vm56_vm1 = vcmp.eq.s32.totalorder %v47_v13, %v55_v14 }
  0x84   :  { %v57_v16 = vsel %vm56_vm1, %v22_v0, 0.0 }
  0x8f   :  { %v25_v6 = vpop.xlane.xlu0 %24 }
  0x90   :  { %v26_v7 = vmax.f32 %v23_v5, %v25_v6 }
  0x92   :  { %v27_v8 = vsub.f32 %v23_v5, %v26_v7  ;;  %45 = vst.msk [vmem:[#allocation2] sm:$0xff] %vm17_vm0, %v26_v7  ;;  %32 = vperm.xlu0 %95, %v26_v7  }
  0x94   :  { %v28_v18 = vmul.f32 1.442695, %v27_v8 }
  0x99   :  { %v72_v33 = vld [vmem:[#allocation2] sm:$0xff] }
 0x111   :  { %v33_v9 = vpop.permute.xlu0 %32 }
 0x112   :  { %v35_v10 = vsub.f32 %v22_v0, %v33_v9 }
 0x114   :  { %v36_v11 = vmul.f32 1.442695, %v35_v10 }
 0x116   :  { %97 = vpow2.f32 %v36_v11 }
 0x117   :  { %99 = vpow2.f32 %v28_v18 }
 0x120   :  { %v98_v15 = vpop.eup %97 }
 0x121   :  { %40 = vadd.xlane.f32.xlu1 %v98_v15  ;;  %v100_v19 = vpop.eup %99 }
 0x122   :  { %v39_v21 = vmul.f32 %v100_v19, %v38_v20 }
 0x125   :  { %58 = vadd.xlane.f32.xlu1 %v57_v16 }
 0x129   :  { %65 = vadd.xlane.f32.xlu1 %v63_v17 }
 0x1ae   :  { %v41_v22 = vpop.xlane.xlu1 %40 }
 0x1af   :  { %v42_v23 = vadd.f32 %v41_v22, %v39_v21 }
 0x1b1   :  { %44 = vst.msk [vmem:[#allocation3] sm:$0xff] %vm17_vm0, %v42_v23 }
 0x1b2   :  { %v59_v25 = vpop.xlane.xlu1 %58 }
 0x1b3   :  { %v60_v26 = vadd.f32 %v59_v25, %v52_v24 }
 0x1b5   :  { %61 = vst.msk [vmem:[#allocation5] sm:$0xff] %vm17_vm0, %v60_v26 }
 0x1b6   :  { %v66_v28 = vpop.xlane.xlu1 %65 }
 0x1b7   :  { %v67_v29 = vadd.f32 %v66_v28, %v64_v27 }
 0x1b8   :  { %v73_v30 = vld [vmem:[#allocation3] sm:$0xff] }
 0x1b9   :  { %101 = vlog2.f32 %v73_v30  ;;  %68 = vst.msk [vmem:[#allocation4] sm:$0xff] %vm17_vm0, %v67_v29 }
 0x1bc   :  { %v77_v35 = vld [vmem:[#allocation5] sm:$0xff] }
 0x1c0   :  { %v81_v36 = vld [vmem:[#allocation4] sm:$0xff] }
 0x1c3   :  { %v102_v31 = vpop.eup %101 }
 0x1c4   :  { %v75_v32 = vmul.f32 0.6931472, %v102_v31 }
 0x1c6   :  { %v76_v34 = vadd.f32 %v75_v32, %v72_v33 }
 0x1c8   :  { %v78_v37 = vsub.f32 %v76_v34, %v77_v35  ;;  %v80_v38 = vmul.f32 32.0, %v76_v34 }
 0x1ca   :  { %79 = vst.msk [vmem:[%s150_s2] sm:$0xff] %vm17_vm0, %v78_v37  ;;  %v82_v39 = vsub.f32 %v80_v38, %v81_v36 }
 0x1cc   :  { %83 = vst.msk [vmem:[%s151_s3] sm:$0xff] %vm17_vm0, %v82_v39 }

</bundles_post_ra>
